<compile_context>
chip_gen: v7x
topology: tpu7x:2x2x1
jax: 0.10.0
libtpu: 0.0.40
codegen_flags: <defaults>
</compile_context>

<pallas_src>
import jax
import jax.numpy as jnp
from jax import lax
from jax.experimental import pallas as pl
from jax.experimental.pallas import tpu as pltpu


def _lm_crit_kernel(x_ref, tgt_ref, msk_ref, out_ref):
    """Grid = (row_blocks, vocab_blocks).  out_ref is the (TN, 1) per-row accumulator
    (VMEM-resident across the vocab axis); it ends up holding -gathered * mask."""
    c = pl.program_id(1)

    @pl.when(c == 0)
    def _init():
        out_ref[...] = jnp.zeros_like(out_ref)

    x = x_ref[...]                                        # (TN, TV) f32
    tv = x.shape[1]
    col = lax.broadcasted_iota(jnp.int32, x.shape, 1)     # local column ids, (TN, TV)
    tgt_local = tgt_ref[...] - c * tv                     # shift target, not the iota
    out_ref[...] += jnp.sum(
        jnp.where(col == tgt_local, x, 0.0), axis=1, keepdims=True)

    @pl.when(c == pl.num_programs(1) - 1)
    def _finalize():
        out_ref[...] = -out_ref[...] * msk_ref[...]


def _round_up(x, m):
    return ((x + m - 1) // m) * m


def _pick_vocab_tile(V, max_tv=2048):
    """Largest multiple-of-128 divisor of V that is <= max_tv; full V if V is small or
    not 128-aligned (a full-extent last dim is always a legal block)."""
    if V <= max_tv or V % 128 != 0:
        return V
    tv = (max_tv // 128) * 128
    while V % tv != 0:
        tv -= 128
    return tv


def _pick_row_tile(N, tv, target_block_bytes, max_tn=4096):
    """Row tile so the (tn, tv) f32 input block is ~target_block_bytes."""
    tn = max(8, target_block_bytes // (tv * 4))
    tn = min(tn, max_tn, _round_up(N, 8))
    return max(8, (tn // 8) * 8)


def language_model_criterion(inp, target, mask, *, row_tile=None, vocab_tile=None,
                             target_block_bytes=8 << 20,
                             vmem_limit_bytes=40 << 20):
    """inp: (B, T, V) f32; target: (B, T) int; mask: (B, T) f32 -> scalar f32."""
    B, T, V = inp.shape
    N = B * T

    x = inp.reshape(N, V).astype(jnp.float32)
    t = target.reshape(N, 1).astype(jnp.int32)
    m = mask.reshape(N, 1).astype(jnp.float32)

    tv = vocab_tile if vocab_tile is not None else _pick_vocab_tile(V)
    assert V % tv == 0 and (tv == V or tv % 128 == 0), (V, tv)
    tn = row_tile if row_tile is not None else _pick_row_tile(N, tv, target_block_bytes)
    assert tn % 8 == 0, tn

    n_pad = _round_up(N, tn)
    if n_pad != N:
        pad = n_pad - N
        x = jnp.pad(x, ((0, pad), (0, 0)))
        t = jnp.pad(t, ((0, pad), (0, 0)))
        m = jnp.pad(m, ((0, pad), (0, 0)))   # padded rows have mask=0 -> contribute 0

    grid = (n_pad // tn, V // tv)

    per_row = pl.pallas_call(
        _lm_crit_kernel,
        out_shape=jax.ShapeDtypeStruct((n_pad, 1), jnp.float32),
        grid_spec=pltpu.PrefetchScalarGridSpec(
            num_scalar_prefetch=0,
            grid=grid,
            in_specs=[
                pl.BlockSpec((tn, tv), lambda r, c: (r, c)),   # log-probs tile
                pl.BlockSpec((tn, 1), lambda r, c: (r, 0)),    # targets (per row block)
                pl.BlockSpec((tn, 1), lambda r, c: (r, 0)),    # mask    (per row block)
            ],
            out_specs=pl.BlockSpec((tn, 1), lambda r, c: (r, 0)),
        ),
        compiler_params=pltpu.CompilerParams(
            dimension_semantics=("parallel", "arbitrary"),
            vmem_limit_bytes=vmem_limit_bytes,
        ),
    )(x, t, m)

    # Final cheap reduction + divide (exactly the module's last line).
    return jnp.sum(per_row) / jnp.sum(m)


def _reference(inp, target, mask):
    B, T, V = inp.shape
    x = inp.reshape(-1, V)
    t = target.reshape(-1)
    m = mask.reshape(-1)
    gathered = jnp.take_along_axis(x, t[:, None], axis=1)[:, 0]
    return jnp.sum(-gathered * m) / jnp.sum(m)


if __name__ == "__main__":
    key = jax.random.PRNGKey(0)

    # Case 1: small shapes (single block).
    B, T, V = 2, 8, 32
    k1, k2, k3 = jax.random.split(key, 3)
    logits = jax.random.normal(k1, (B, T, V), dtype=jnp.float32)
    logprobs = jax.nn.log_softmax(logits, axis=-1)
    target = jax.random.randint(k2, (B, T), 0, V, dtype=jnp.int32)
    lens = jax.random.randint(k3, (B,), T // 2, T + 1)
    mask = (jnp.arange(T)[None, :] < lens[:, None]).astype(jnp.float32)

    out = jax.block_until_ready(language_model_criterion(logprobs, target, mask))
    ref = _reference(logprobs, target, mask)
    assert jnp.allclose(out, ref, atol=1e-5, rtol=1e-5), (out, ref)

    # Case 2: exercises vocab tiling, multiple row blocks, and row padding (N=26 -> 32).
    B2, T2, V2 = 2, 13, 256
    k4, k5, k6 = jax.random.split(jax.random.PRNGKey(0), 3)
    lp2 = jax.nn.log_softmax(jax.random.normal(k4, (B2, T2, V2), dtype=jnp.float32), -1)
    tg2 = jax.random.randint(k5, (B2, T2), 0, V2, dtype=jnp.int32)
    ln2 = jax.random.randint(k6, (B2,), T2 // 2, T2 + 1)
    mk2 = (jnp.arange(T2)[None, :] < ln2[:, None]).astype(jnp.float32)

    out2 = jax.block_until_ready(
        language_model_criterion(lp2, tg2, mk2, row_tile=8, vocab_tile=128))
    ref2 = _reference(lp2, tg2, mk2)
    assert jnp.allclose(out2, ref2, atol=1e-5, rtol=1e-5), (out2, ref2)

    print("KERNEL_OK")
</pallas_src>

<mosaic_0001>
module attributes {stable_mosaic.version = 11 : i64} {
  func.func @_lm_crit_kernel(%arg0: i32, %arg1: i32, %arg2: memref<16x32xf32, #tpu.memory_space<vmem>>, %arg3: memref<16x1xi32, #tpu.memory_space<vmem>>, %arg4: memref<16x1xf32, #tpu.memory_space<vmem>>, %arg5: memref<16x1xf32, #tpu.memory_space<vmem>>) attributes {dimension_semantics = [#tpu.dimension_semantics<parallel>, #tpu.dimension_semantics<arbitrary>], iteration_bounds = array<i64: 1, 1>, scalar_prefetch = 0 : i64, scratch_operands = 0 : i64, tpu.core_type = #tpu.core_type<tc>, window_params = [{transform_indices = @transform_0, window_bounds = array<i64: 16, 32>}, {transform_indices = @transform_1, window_bounds = array<i64: 16, 1>}, {transform_indices = @transform_2, window_bounds = array<i64: 16, 1>}, {transform_indices = @transform_3, window_bounds = array<i64: 16, 1>}]} {
    %c0_i32 = arith.constant 0 : i32
    %0 = arith.cmpi eq, %arg1, %c0_i32 : i32
    %1 = arith.extui %0 : i1 to i32
    %c0_i32_0 = arith.constant 0 : i32
    %2 = arith.cmpi ne, %1, %c0_i32_0 : i32
    scf.if %2 {
      %cst_11 = arith.constant 0.000000e+00 : f32
      %21 = vector.broadcast %cst_11 : f32 to vector<16x1xf32>
      %c0_12 = arith.constant 0 : index
      %c0_13 = arith.constant 0 : index
      %22 = vector.load %arg5[%c0_12, %c0_13] : memref<16x1xf32, #tpu.memory_space<vmem>>, vector<16x1xf32>
      tpu.vector_store %arg5[%c0_12, %c0_13], %21 {strides = array<i32>} : memref<16x1xf32, #tpu.memory_space<vmem>>, vector<16x1xf32>,
    } else {
    }
    %c0 = arith.constant 0 : index
    %c0_1 = arith.constant 0 : index
    %3 = vector.load %arg2[%c0, %c0_1] : memref<16x32xf32, #tpu.memory_space<vmem>>, vector<16x32xf32>
    %4 = tpu.iota {dimensions = array<i32: 1>} : vector<16x32xi32>
    %c0_2 = arith.constant 0 : index
    %c0_3 = arith.constant 0 : index
    %5 = vector.load %arg3[%c0_2, %c0_3] : memref<16x1xi32, #tpu.memory_space<vmem>>, vector<16x1xi32>
    %c32_i32 = arith.constant 32 : i32
    %6 = arith.muli %arg1, %c32_i32 : i32
    %7 = vector.broadcast %6 : i32 to vector<16x1xi32>
    %8 = arith.subi %5, %7 : vector<16x1xi32>
    %c0_4 = arith.constant 0 : index
    %c0_5 = arith.constant 0 : index
    %9 = vector.load %arg5[%c0_4, %c0_5] : memref<16x1xf32, #tpu.memory_space<vmem>>, vector<16x1xf32>
    %10 = vector.broadcast %8 : vector<16x1xi32> to vector<16x32xi32>
    %11 = arith.cmpi eq, %4, %10 : vector<16x32xi32>
    %cst = arith.constant 0.000000e+00 : f32
    %12 = vector.broadcast %cst : f32 to vector<16x32xf32>
    %13 = arith.select %11, %3, %12 : vector<16x32xi1>, vector<16x32xf32>
    %cst_6 = arith.constant dense<0.000000e+00> : vector<16xf32>
    %14 = vector.multi_reduction <add>, %13, %cst_6 [1] : vector<16x32xf32> to vector<16xf32>
    %15 = vector.shape_cast %14 : vector<16xf32> to vector<16x1xf32>
    %16 = arith.addf %9, %15 : vector<16x1xf32>
    %c0_7 = arith.constant 0 : index
    %c0_8 = arith.constant 0 : index
    %17 = vector.load %arg5[%c0_7, %c0_8] : memref<16x1xf32, #tpu.memory_space<vmem>>, vector<16x1xf32>
    tpu.vector_store %arg5[%c0_7, %c0_8], %16 {strides = array<i32>} : memref<16x1xf32, #tpu.memory_space<vmem>>, vector<16x1xf32>,
    %c0_i32_9 = arith.constant 0 : i32
    %18 = arith.cmpi eq, %arg1, %c0_i32_9 : i32
    %19 = arith.extui %18 : i1 to i32
    %c0_i32_10 = arith.constant 0 : i32
    %20 = arith.cmpi ne, %19, %c0_i32_10 : i32
    scf.if %20 {
      %c0_11 = arith.constant 0 : index
      %c0_12 = arith.constant 0 : index
      %21 = vector.load %arg5[%c0_11, %c0_12] : memref<16x1xf32, #tpu.memory_space<vmem>>, vector<16x1xf32>
      %cst_13 = arith.constant 0.000000e+00 : f32
      %22 = vector.broadcast %cst_13 : f32 to vector<16x1xf32>
      %23 = arith.subf %22, %21 : vector<16x1xf32>
      %c0_14 = arith.constant 0 : index
      %c0_15 = arith.constant 0 : index
      %24 = vector.load %arg4[%c0_14, %c0_15] : memref<16x1xf32, #tpu.memory_space<vmem>>, vector<16x1xf32>
      %25 = arith.mulf %23, %24 : vector<16x1xf32>
      %c0_16 = arith.constant 0 : index
      %c0_17 = arith.constant 0 : index
      %26 = vector.load %arg5[%c0_16, %c0_17] : memref<16x1xf32, #tpu.memory_space<vmem>>, vector<16x1xf32>
      tpu.vector_store %arg5[%c0_16, %c0_17], %25 {strides = array<i32>} : memref<16x1xf32, #tpu.memory_space<vmem>>, vector<16x1xf32>,
    } else {
    }
    return
  }
  func.func @transform_0(%arg0: i32, %arg1: i32) -> (i32, i32) {
    %c0_i32 = arith.constant 0 : i32
    return %arg0, %arg1 : i32, i32
  }
  func.func @transform_1(%arg0: i32, %arg1: i32) -> (i32, i32) {
    %c0_i32 = arith.constant 0 : i32
    %c0_i32_0 = arith.constant 0 : i32
    return %arg0, %c0_i32 : i32, i32
  }
  func.func @transform_2(%arg0: i32, %arg1: i32) -> (i32, i32) {
    %c0_i32 = arith.constant 0 : i32
    %c0_i32_0 = arith.constant 0 : i32
    return %arg0, %c0_i32 : i32, i32
  }
  func.func @transform_3(%arg0: i32, %arg1: i32) -> (i32, i32) {
    %c0_i32 = arith.constant 0 : i32
    %c0_i32_0 = arith.constant 0 : i32
    return %arg0, %c0_i32 : i32, i32
  }
}

</mosaic_0001>

<bundles_post_ra>
// kernel: tpu_custom_call.1
= control target key start
LH: loop header
LB: loop body
LE: loop exit
PB: predicated region body
PF: predicated region fallthrough
CT: control target
= control target key end

     0   :  { %v75_v0 = vmov 0   ;;  %vm18_vm0 = vcmask 7168   ;;  %v76_v3 = vmov 0.0   ;;  %v23_v4 = vlaneseq  ;;  %s151_s1 = inlined_call_operand.vmem [shape: s32[16,1], index: 1, kind: input, shape index: {}]   ;;  %s152_s3 = inlined_call_operand.vmem [shape: f32[16,1], index: 3, kind: output, shape index: {}]   ;;  %s153_s0 = inlined_call_operand.vmem [shape: f32[16,32], index: 0, kind: input, shape index: {}]   ;;  %s154_s2 = inlined_call_operand.vmem [shape: f32[16,1], index: 2, kind: input, shape index: {}]  }
   0x1   :  { %74 = vset.pattern.permute.xlu0 %v75_v0  ;;  %v25_v1 = vld [vmem:[%s151_s1] sm:$0xff]  ;;  %v26_v2 = vld [vmem:[%s151_s1 + $0x8] sm:$0xff]  ;;  %19 = vst.msk [vmem:[%s152_s3] sm:$0xff] %vm18_vm0, %v76_v3  ;;  %20 = vst.msk [vmem:[%s152_s3 + $0x8] sm:$0xff] %vm18_vm0, %v76_v3  ;;  %vm43_vm1 = vcmask 261120  }
   0x2   :  { %34 = vperm.xlu0 %74, %v25_v1   ;;  %v24_v5 = vand.u32 127, %v23_v4  ;;  %v21_v6 = vld [vmem:[%s153_s0] sm:$0xff]  ;;  %v22_v10 = vld [vmem:[%s153_s0 + $0x8] sm:$0xff] }
   0x3   :  { %v62_v20 = vld [vmem:[%s154_s2] sm:$0xff]  ;;  %v63_v24 = vld [vmem:[%s154_s2 + $0x8] sm:$0xff] }
   0x6   :  { %37 = vperm.xlu0 %74, %v26_v2  }
   0x8   :  { %v31_v14 = vld [vmem:[%s152_s3] sm:$0xff]  ;;  %v32_v17 = vld [vmem:[%s152_s3 + $0x8] sm:$0xff] }
  0x81   :  { %v35_v7 = vpop.permute.xlu0 %34 }
  0x82   :  { %vm39_vm2 = vcmp.eq.s32.totalorder %v24_v5, %v35_v7 }
  0x83   :  { %v41_v8 = vsel %vm39_vm2, %v21_v6, 0.0 }
  0x84   :  { %v44_v9 = vsel %vm43_vm1, %v41_v8, 0.0 }
  0x85   :  { %v38_v11 = vpop.permute.xlu0 %37  ;;  %45 = vadd.xlane.f32.xlu1 %v44_v9 }
  0x86   :  { %vm40_vm3 = vcmp.eq.s32.totalorder %v24_v5, %v38_v11 }
  0x87   :  { %v42_v12 = vsel %vm40_vm3, %v22_v10, 0.0 }
  0x88   :  { %v47_v13 = vsel %vm43_vm1, %v42_v12, 0.0 }
  0x89   :  { %48 = vadd.xlane.f32.xlu1 %v47_v13 }
 0x112   :  { %v46_v15 = vpop.xlane.xlu1 %45 }
 0x113   :  { %v50_v16 = vadd.f32 %v46_v15, %v31_v14 }
 0x115   :  { %53 = vst.msk [vmem:[%s152_s3] sm:$0xff] %vm18_vm0, %v50_v16 }
 0x116   :  { %v49_v18 = vpop.xlane.xlu1 %48 }
 0x117   :  { %v51_v19 = vadd.f32 %v49_v18, %v32_v17 }
 0x119   :  { %54 = vst.msk [vmem:[%s152_s3 + $0x8] sm:$0xff] %vm18_vm0, %v51_v19 }
 0x11c   :  { %v58_v21 = vld [vmem:[%s152_s3] sm:$0xff] }
 0x11d   :  { %v60_v22 = vsub.f32 0.0, %v58_v21 }
 0x11f   :  { %v64_v23 = vmul.f32 %v62_v20, %v60_v22 }
 0x120   :  { %v59_v25 = vld [vmem:[%s152_s3 + $0x8] sm:$0xff] }
 0x121   :  { %66 = vst.msk [vmem:[%s152_s3] sm:$0xff] %vm18_vm0, %v64_v23  ;;  %v61_v26 = vsub.f32 0.0, %v59_v25 }
 0x123   :  { %v65_v27 = vmul.f32 %v63_v24, %v61_v26 }
 0x125   :  { %67 = vst.msk [vmem:[%s152_s3 + $0x8] sm:$0xff] %vm18_vm0, %v65_v27 }

</bundles_post_ra>
